<compile_context>
chip_gen: v6e
topology: v6e:2x2x1
jax: 0.10.0
libtpu: 0.0.40
codegen_flags: <defaults>
</compile_context>

<pallas_src>
import functools

import jax
import jax.numpy as jnp
from jax.experimental import pallas as pl
from jax.experimental.pallas import tpu as pltpu


def _round_up(x, m):
    return (x + m - 1) // m * m


def _pick_tile_h(ho, wo, target_rows=128):
    """Pick tile_h dividing ho with tile_h*wo <= max(target_rows, wo).

    Prefers panels whose row count is a multiple of 8 (sublane aligned),
    then the largest such panel.
    """
    cap = max(target_rows, wo)
    best, best_key = 1, (-1, -1)
    for t in range(1, ho + 1):
        if ho % t != 0:
            continue
        rows = t * wo
        if rows > cap:
            continue
        key = (1 if rows % 8 == 0 else 0, rows)
        if key > best_key:
            best, best_key = t, key
    return best


def _dyn_conv_kernel(x_ref, w_ref, b_ref, o_ref, *, kh, kw, tile_h, wo):
    """One (batch, row-tile) grid step of the direct convolution.

    x_ref : [Hp, Wp, Cin]        whole zero-padded image of this batch element
    w_ref : [KH*KW, Cin, Cpad]   scale-folded, Cout-padded weights
    b_ref : [1, Cpad]            Cout-padded bias (f32)
    o_ref : [TILE_H, Wo, Cpad]   lane-dense output tile (Cpad % 128 == 0)
    """
    cin = x_ref.shape[-1]
    cpad = o_ref.shape[-1]
    rows = tile_h * wo

    r = pl.program_id(1)
    row0 = pl.multiple_of(r * tile_h, tile_h)

    # Accumulator seeded with the bias (one sublane-broadcast, hoisted out of
    # the tap loop); stays in vregs for tiles of this size.
    acc = jnp.broadcast_to(b_ref[...], (rows, cpad))

    # Static unrolled loop over the KH*KW taps: each tap window is loaded
    # straight from the ref, flattened to a [rows, Cin] panel, and
    # accumulated with one MXU matmul (f32 accumulation).
    for i in range(kh):
        for j in range(kw):
            patch = x_ref[pl.ds(row0 + i, tile_h), pl.ds(j, wo), :]
            patch = patch.reshape(rows, cin)
            acc = acc + jnp.dot(patch, w_ref[i * kw + j],
                                preferred_element_type=jnp.float32)

    o_ref[...] = acc.reshape(tile_h, wo, cpad).astype(o_ref.dtype)


def dynamic_conv2d(x_nchw, weight_oihw, bias, *, active_in, active_out,
                   max_in, padding=1):
    """Forward of DynamicConv2d in 'order' mode (stride=1, dilation=1, groups=1).

    x_nchw      : [N, active_in, H, W]
    weight_oihw : [max_out, max_in, KH, KW]   (full parameter)
    bias        : [max_out]
    """
    n, cin, h, w = x_nchw.shape
    assert cin == active_in
    kh, kw = weight_oihw.shape[2], weight_oihw.shape[3]
    ho = h + 2 * padding - kh + 1
    wo = w + 2 * padding - kw + 1
    hp = h + 2 * padding
    wp = w + 2 * padding
    scale = max_in / active_in                       # offset_scale

    cpad = _round_up(active_out, 128)                # lane-dense output channels
    tile_h = _pick_tile_h(ho, wo)                    # output rows per grid step
    n_row_tiles = ho // tile_h

    # 'order' mode weight/bias slicing; offset_scale folded into the weights
    # (scaling KH*KW*Cin*Cout weight elements is ~free vs. scaling x).
    w_act = (weight_oihw[:active_out, :active_in].astype(jnp.float32) * scale)
    # OIHW -> [KH*KW, Cin, Cout] -> pad Cout to Cpad; keep input dtype so the
    # MXU consumes bf16/f32 natively (accumulation stays f32 in-kernel).
    w_taps = jnp.transpose(w_act, (2, 3, 1, 0)).reshape(kh * kw, active_in,
                                                        active_out)
    w_taps = jnp.pad(w_taps,
                     ((0, 0), (0, 0), (0, cpad - active_out))
                     ).astype(x_nchw.dtype)
    b2d = jnp.pad(bias[:active_out].astype(jnp.float32),
                  (0, cpad - active_out)).reshape(1, cpad)

    # NCHW -> NHWC + spatial zero-pad (XLA fuses these into one pass).
    # TODO(synk): callers that keep activations NHWC end-to-end can skip both
    # transposes; border padding could also be folded into the kernel via
    # masked edge loads for one fewer HBM pass.
    x_nhwc = jnp.transpose(x_nchw, (0, 2, 3, 1))
    x_pad = jnp.pad(x_nhwc,
                    ((0, 0), (padding, padding), (padding, padding), (0, 0)))

    kernel = functools.partial(_dyn_conv_kernel, kh=kh, kw=kw,
                               tile_h=tile_h, wo=wo)

    flops = int(2 * n * ho * wo * active_in * active_out * kh * kw)
    bytes_accessed = int(x_pad.size * x_pad.dtype.itemsize
                         + w_taps.size * w_taps.dtype.itemsize
                         + b2d.size * 4
                         + n * ho * wo * cpad * x_nchw.dtype.itemsize)

    # TODO(synk): the input block is the whole padded image per batch element;
    # very large images would need halo'd row tiling of the input as well.
    out_pad = pl.pallas_call(
        kernel,
        out_shape=jax.ShapeDtypeStruct((n, ho, wo, cpad), x_nchw.dtype),
        grid_spec=pltpu.PrefetchScalarGridSpec(
            num_scalar_prefetch=0,
            grid=(n, n_row_tiles),
            in_specs=[
                # whole padded image of batch element b (reused across row tiles)
                pl.BlockSpec((None, hp, wp, active_in),
                             lambda b, r: (b, 0, 0, 0)),
                # weights / bias: broadcast across the grid (stay resident)
                pl.BlockSpec((kh * kw, active_in, cpad),
                             lambda b, r: (0, 0, 0)),
                pl.BlockSpec((1, cpad), lambda b, r: (0, 0)),
            ],
            out_specs=pl.BlockSpec((None, tile_h, wo, cpad),
                                   lambda b, r: (b, r, 0, 0)),
        ),
        compiler_params=pltpu.CompilerParams(
            dimension_semantics=("parallel", "parallel")),
        cost_estimate=pl.CostEstimate(flops=flops, transcendentals=0,
                                      bytes_accessed=bytes_accessed),
    )(x_pad, w_taps, b2d)

    # Strip channel padding + NHWC -> NCHW (fused into a single XLA pass).
    return jnp.transpose(out_pad[..., :active_out], (0, 3, 1, 2))


if __name__ == "__main__":
    # Module config: max_in_channels=8, max_out_channels=8, mode='order',
    # kernel_size=3, stride=1, padding=1, bias=True.
    # Active sub-network: idx_in=4 channels, idx_out=4 channels.
    MAX_IN, MAX_OUT = 8, 8
    ACT_IN, ACT_OUT = 4, 4
    N, H, W, K, PAD = 2, 16, 16, 3, 1

    key = jax.random.PRNGKey(0)
    kx, kw_, kb = jax.random.split(key, 3)
    x = jax.random.normal(kx, (N, ACT_IN, H, W), dtype=jnp.float32)
    weight = jax.random.normal(kw_, (MAX_OUT, MAX_IN, K, K),
                               dtype=jnp.float32) * 0.1
    bias = jax.random.normal(kb, (MAX_OUT,), dtype=jnp.float32) * 0.1

    out = dynamic_conv2d(x, weight, bias, active_in=ACT_IN,
                         active_out=ACT_OUT, max_in=MAX_IN, padding=PAD)
    out = jax.block_until_ready(out)

    # Reference check against XLA conv (same semantics as torch F.conv2d).
    scale = MAX_IN / ACT_IN
    ref = jax.lax.conv_general_dilated(
        x * scale, weight[:ACT_OUT, :ACT_IN], window_strides=(1, 1),
        padding=((PAD, PAD), (PAD, PAD)),
        dimension_numbers=("NCHW", "OIHW", "NCHW"))
    ref = ref + bias[:ACT_OUT].reshape(1, ACT_OUT, 1, 1)

    assert out.shape == (N, ACT_OUT, H, W), out.shape
    assert jnp.allclose(out, ref, atol=1e-4, rtol=1e-4), float(
        jnp.max(jnp.abs(out - ref)))
    print("KERNEL_OK")
</pallas_src>

<mosaic_0001>
module attributes {stable_mosaic.version = 11 : i64} {
  func.func @_dyn_conv_kernel(%arg0: i32, %arg1: i32, %arg2: memref<1x18x18x4xf32, #tpu.memory_space<vmem>>, %arg3: memref<9x4x128xf32, #tpu.memory_space<vmem>>, %arg4: memref<1x128xf32, #tpu.memory_space<vmem>>, %arg5: memref<1x8x16x128xf32, #tpu.memory_space<vmem>>) attributes {dimension_semantics = [#tpu.dimension_semantics<parallel>, #tpu.dimension_semantics<parallel>], iteration_bounds = array<i64: 2, 2>, scalar_prefetch = 0 : i64, scratch_operands = 0 : i64, tpu.core_type = #tpu.core_type<tc>, window_params = [{transform_indices = @transform_0, window_bounds = array<i64: 1, 18, 18, 4>}, {pipeline_mode = #tpu.pipeline_mode<synchronous>, transform_indices = @transform_1, window_bounds = array<i64: 9, 4, 128>}, {pipeline_mode = #tpu.pipeline_mode<synchronous>, transform_indices = @transform_2, window_bounds = array<i64: 1, 128>}, {transform_indices = @transform_3, window_bounds = array<i64: 1, 8, 16, 128>}]} {
    %c8_i32 = arith.constant 8 : i32
    %0 = arith.muli %arg1, %c8_i32 : i32
    %1 = tpu.assume_multiple %0, 8 : i32
    %c0 = arith.constant 0 : index
    %c0_0 = arith.constant 0 : index
    %2 = vector.load %arg4[%c0, %c0_0] : memref<1x128xf32, #tpu.memory_space<vmem>>, vector<1x128xf32>
    %3 = vector.shape_cast %2 : vector<1x128xf32> to vector<1x128xf32>
    %4 = vector.broadcast %3 : vector<1x128xf32> to vector<128x128xf32>
    %c0_i32 = arith.constant 0 : i32
    %5 = arith.addi %1, %c0_i32 : i32
    %c0_1 = arith.constant 0 : index
    %6 = arith.index_cast %5 : i32 to index
    %c0_2 = arith.constant 0 : index
    %c0_3 = arith.constant 0 : index
    %7 = vector.load %arg2[%c0_1, %6, %c0_2, %c0_3] : memref<1x18x18x4xf32, #tpu.memory_space<vmem>>, vector<1x8x16x4xf32>
    %8 = vector.shape_cast %7 : vector<1x8x16x4xf32> to vector<8x16x4xf32>
    %9 = vector.shape_cast %8 : vector<8x16x4xf32> to vector<128x4xf32>
    %c0_4 = arith.constant 0 : index
    %c0_5 = arith.constant 0 : index
    %c0_6 = arith.constant 0 : index
    %10 = vector.load %arg3[%c0_4, %c0_5, %c0_6] : memref<9x4x128xf32, #tpu.memory_space<vmem>>, vector<1x4x128xf32>
    %11 = vector.shape_cast %10 : vector<1x4x128xf32> to vector<4x128xf32>
    %cst = arith.constant dense<0.000000e+00> : vector<128x128xf32>
    %12 = tpu.matmul %9, %11, %cst {dimension_numbers = #tpu.dot_dimension_numbers<[1], [0], [0], [1], [0, 0, 1, 1], [], []>} : vector<128x4xf32>, vector<4x128xf32>, vector<128x128xf32> -> vector<128x128xf32>
    %13 = arith.addf %4, %12 : vector<128x128xf32>
    %c0_i32_7 = arith.constant 0 : i32
    %14 = arith.addi %1, %c0_i32_7 : i32
    %c0_8 = arith.constant 0 : index
    %15 = arith.index_cast %14 : i32 to index
    %c1 = arith.constant 1 : index
    %c0_9 = arith.constant 0 : index
    %16 = vector.load %arg2[%c0_8, %15, %c1, %c0_9] : memref<1x18x18x4xf32, #tpu.memory_space<vmem>>, vector<1x8x16x4xf32>
    %17 = vector.shape_cast %16 : vector<1x8x16x4xf32> to vector<8x16x4xf32>
    %18 = vector.shape_cast %17 : vector<8x16x4xf32> to vector<128x4xf32>
    %c1_10 = arith.constant 1 : index
    %c0_11 = arith.constant 0 : index
    %c0_12 = arith.constant 0 : index
    %19 = vector.load %arg3[%c1_10, %c0_11, %c0_12] : memref<9x4x128xf32, #tpu.memory_space<vmem>>, vector<1x4x128xf32>
    %20 = vector.shape_cast %19 : vector<1x4x128xf32> to vector<4x128xf32>
    %cst_13 = arith.constant dense<0.000000e+00> : vector<128x128xf32>
    %21 = tpu.matmul %18, %20, %cst_13 {dimension_numbers = #tpu.dot_dimension_numbers<[1], [0], [0], [1], [0, 0, 1, 1], [], []>} : vector<128x4xf32>, vector<4x128xf32>, vector<128x128xf32> -> vector<128x128xf32>
    %22 = arith.addf %13, %21 : vector<128x128xf32>
    %c0_i32_14 = arith.constant 0 : i32
    %23 = arith.addi %1, %c0_i32_14 : i32
    %c0_15 = arith.constant 0 : index
    %24 = arith.index_cast %23 : i32 to index
    %c2 = arith.constant 2 : index
    %c0_16 = arith.constant 0 : index
    %25 = vector.load %arg2[%c0_15, %24, %c2, %c0_16] : memref<1x18x18x4xf32, #tpu.memory_space<vmem>>, vector<1x8x16x4xf32>
    %26 = vector.shape_cast %25 : vector<1x8x16x4xf32> to vector<8x16x4xf32>
    %27 = vector.shape_cast %26 : vector<8x16x4xf32> to vector<128x4xf32>
    %c2_17 = arith.constant 2 : index
    %c0_18 = arith.constant 0 : index
    %c0_19 = arith.constant 0 : index
    %28 = vector.load %arg3[%c2_17, %c0_18, %c0_19] : memref<9x4x128xf32, #tpu.memory_space<vmem>>, vector<1x4x128xf32>
    %29 = vector.shape_cast %28 : vector<1x4x128xf32> to vector<4x128xf32>
    %cst_20 = arith.constant dense<0.000000e+00> : vector<128x128xf32>
    %30 = tpu.matmul %27, %29, %cst_20 {dimension_numbers = #tpu.dot_dimension_numbers<[1], [0], [0], [1], [0, 0, 1, 1], [], []>} : vector<128x4xf32>, vector<4x128xf32>, vector<128x128xf32> -> vector<128x128xf32>
    %31 = arith.addf %22, %30 : vector<128x128xf32>
    %c1_i32 = arith.constant 1 : i32
    %32 = arith.addi %1, %c1_i32 : i32
    %c0_21 = arith.constant 0 : index
    %33 = arith.index_cast %32 : i32 to index
    %c0_22 = arith.constant 0 : index
    %c0_23 = arith.constant 0 : index
    %34 = vector.load %arg2[%c0_21, %33, %c0_22, %c0_23] : memref<1x18x18x4xf32, #tpu.memory_space<vmem>>, vector<1x8x16x4xf32>
    %35 = vector.shape_cast %34 : vector<1x8x16x4xf32> to vector<8x16x4xf32>
    %36 = vector.shape_cast %35 : vector<8x16x4xf32> to vector<128x4xf32>
    %c3 = arith.constant 3 : index
    %c0_24 = arith.constant 0 : index
    %c0_25 = arith.constant 0 : index
    %37 = vector.load %arg3[%c3, %c0_24, %c0_25] : memref<9x4x128xf32, #tpu.memory_space<vmem>>, vector<1x4x128xf32>
    %38 = vector.shape_cast %37 : vector<1x4x128xf32> to vector<4x128xf32>
    %cst_26 = arith.constant dense<0.000000e+00> : vector<128x128xf32>
    %39 = tpu.matmul %36, %38, %cst_26 {dimension_numbers = #tpu.dot_dimension_numbers<[1], [0], [0], [1], [0, 0, 1, 1], [], []>} : vector<128x4xf32>, vector<4x128xf32>, vector<128x128xf32> -> vector<128x128xf32>
    %40 = arith.addf %31, %39 : vector<128x128xf32>
    %c1_i32_27 = arith.constant 1 : i32
    %41 = arith.addi %1, %c1_i32_27 : i32
    %c0_28 = arith.constant 0 : index
    %42 = arith.index_cast %41 : i32 to index
    %c1_29 = arith.constant 1 : index
    %c0_30 = arith.constant 0 : index
    %43 = vector.load %arg2[%c0_28, %42, %c1_29, %c0_30] : memref<1x18x18x4xf32, #tpu.memory_space<vmem>>, vector<1x8x16x4xf32>
    %44 = vector.shape_cast %43 : vector<1x8x16x4xf32> to vector<8x16x4xf32>
    %45 = vector.shape_cast %44 : vector<8x16x4xf32> to vector<128x4xf32>
    %c4 = arith.constant 4 : index
    %c0_31 = arith.constant 0 : index
    %c0_32 = arith.constant 0 : index
    %46 = vector.load %arg3[%c4, %c0_31, %c0_32] : memref<9x4x128xf32, #tpu.memory_space<vmem>>, vector<1x4x128xf32>
    %47 = vector.shape_cast %46 : vector<1x4x128xf32> to vector<4x128xf32>
    %cst_33 = arith.constant dense<0.000000e+00> : vector<128x128xf32>
    %48 = tpu.matmul %45, %47, %cst_33 {dimension_numbers = #tpu.dot_dimension_numbers<[1], [0], [0], [1], [0, 0, 1, 1], [], []>} : vector<128x4xf32>, vector<4x128xf32>, vector<128x128xf32> -> vector<128x128xf32>
    %49 = arith.addf %40, %48 : vector<128x128xf32>
    %c1_i32_34 = arith.constant 1 : i32
    %50 = arith.addi %1, %c1_i32_34 : i32
    %c0_35 = arith.constant 0 : index
    %51 = arith.index_cast %50 : i32 to index
    %c2_36 = arith.constant 2 : index
    %c0_37 = arith.constant 0 : index
    %52 = vector.load %arg2[%c0_35, %51, %c2_36, %c0_37] : memref<1x18x18x4xf32, #tpu.memory_space<vmem>>, vector<1x8x16x4xf32>
    %53 = vector.shape_cast %52 : vector<1x8x16x4xf32> to vector<8x16x4xf32>
    %54 = vector.shape_cast %53 : vector<8x16x4xf32> to vector<128x4xf32>
    %c5 = arith.constant 5 : index
    %c0_38 = arith.constant 0 : index
    %c0_39 = arith.constant 0 : index
    %55 = vector.load %arg3[%c5, %c0_38, %c0_39] : memref<9x4x128xf32, #tpu.memory_space<vmem>>, vector<1x4x128xf32>
    %56 = vector.shape_cast %55 : vector<1x4x128xf32> to vector<4x128xf32>
    %cst_40 = arith.constant dense<0.000000e+00> : vector<128x128xf32>
    %57 = tpu.matmul %54, %56, %cst_40 {dimension_numbers = #tpu.dot_dimension_numbers<[1], [0], [0], [1], [0, 0, 1, 1], [], []>} : vector<128x4xf32>, vector<4x128xf32>, vector<128x128xf32> -> vector<128x128xf32>
    %58 = arith.addf %49, %57 : vector<128x128xf32>
    %c2_i32 = arith.constant 2 : i32
    %59 = arith.addi %1, %c2_i32 : i32
    %c0_41 = arith.constant 0 : index
    %60 = arith.index_cast %59 : i32 to index
    %c0_42 = arith.constant 0 : index
    %c0_43 = arith.constant 0 : index
    %61 = vector.load %arg2[%c0_41, %60, %c0_42, %c0_43] : memref<1x18x18x4xf32, #tpu.memory_space<vmem>>, vector<1x8x16x4xf32>
    %62 = vector.shape_cast %61 : vector<1x8x16x4xf32> to vector<8x16x4xf32>
    %63 = vector.shape_cast %62 : vector<8x16x4xf32> to vector<128x4xf32>
    %c6 = arith.constant 6 : index
    %c0_44 = arith.constant 0 : index
    %c0_45 = arith.constant 0 : index
    %64 = vector.load %arg3[%c6, %c0_44, %c0_45] : memref<9x4x128xf32, #tpu.memory_space<vmem>>, vector<1x4x128xf32>
    %65 = vector.shape_cast %64 : vector<1x4x128xf32> to vector<4x128xf32>
    %cst_46 = arith.constant dense<0.000000e+00> : vector<128x128xf32>
    %66 = tpu.matmul %63, %65, %cst_46 {dimension_numbers = #tpu.dot_dimension_numbers<[1], [0], [0], [1], [0, 0, 1, 1], [], []>} : vector<128x4xf32>, vector<4x128xf32>, vector<128x128xf32> -> vector<128x128xf32>
    %67 = arith.addf %58, %66 : vector<128x128xf32>
    %c2_i32_47 = arith.constant 2 : i32
    %68 = arith.addi %1, %c2_i32_47 : i32
    %c0_48 = arith.constant 0 : index
    %69 = arith.index_cast %68 : i32 to index
    %c1_49 = arith.constant 1 : index
    %c0_50 = arith.constant 0 : index
    %70 = vector.load %arg2[%c0_48, %69, %c1_49, %c0_50] : memref<1x18x18x4xf32, #tpu.memory_space<vmem>>, vector<1x8x16x4xf32>
    %71 = vector.shape_cast %70 : vector<1x8x16x4xf32> to vector<8x16x4xf32>
    %72 = vector.shape_cast %71 : vector<8x16x4xf32> to vector<128x4xf32>
    %c7 = arith.constant 7 : index
    %c0_51 = arith.constant 0 : index
    %c0_52 = arith.constant 0 : index
    %73 = vector.load %arg3[%c7, %c0_51, %c0_52] : memref<9x4x128xf32, #tpu.memory_space<vmem>>, vector<1x4x128xf32>
    %74 = vector.shape_cast %73 : vector<1x4x128xf32> to vector<4x128xf32>
    %cst_53 = arith.constant dense<0.000000e+00> : vector<128x128xf32>
    %75 = tpu.matmul %72, %74, %cst_53 {dimension_numbers = #tpu.dot_dimension_numbers<[1], [0], [0], [1], [0, 0, 1, 1], [], []>} : vector<128x4xf32>, vector<4x128xf32>, vector<128x128xf32> -> vector<128x128xf32>
    %76 = arith.addf %67, %75 : vector<128x128xf32>
    %c2_i32_54 = arith.constant 2 : i32
    %77 = arith.addi %1, %c2_i32_54 : i32
    %c0_55 = arith.constant 0 : index
    %78 = arith.index_cast %77 : i32 to index
    %c2_56 = arith.constant 2 : index
    %c0_57 = arith.constant 0 : index
    %79 = vector.load %arg2[%c0_55, %78, %c2_56, %c0_57] : memref<1x18x18x4xf32, #tpu.memory_space<vmem>>, vector<1x8x16x4xf32>
    %80 = vector.shape_cast %79 : vector<1x8x16x4xf32> to vector<8x16x4xf32>
    %81 = vector.shape_cast %80 : vector<8x16x4xf32> to vector<128x4xf32>
    %c8 = arith.constant 8 : index
    %c0_58 = arith.constant 0 : index
    %c0_59 = arith.constant 0 : index
    %82 = vector.load %arg3[%c8, %c0_58, %c0_59] : memref<9x4x128xf32, #tpu.memory_space<vmem>>, vector<1x4x128xf32>
    %83 = vector.shape_cast %82 : vector<1x4x128xf32> to vector<4x128xf32>
    %cst_60 = arith.constant dense<0.000000e+00> : vector<128x128xf32>
    %84 = tpu.matmul %81, %83, %cst_60 {dimension_numbers = #tpu.dot_dimension_numbers<[1], [0], [0], [1], [0, 0, 1, 1], [], []>} : vector<128x4xf32>, vector<4x128xf32>, vector<128x128xf32> -> vector<128x128xf32>
    %85 = arith.addf %76, %84 : vector<128x128xf32>
    %86 = vector.shape_cast %85 : vector<128x128xf32> to vector<8x16x128xf32>
    %c0_61 = arith.constant 0 : index
    %c0_62 = arith.constant 0 : index
    %c0_63 = arith.constant 0 : index
    %c0_64 = arith.constant 0 : index
    %87 = vector.load %arg5[%c0_61, %c0_62, %c0_63, %c0_64] : memref<1x8x16x128xf32, #tpu.memory_space<vmem>>, vector<1x8x16x128xf32>
    %88 = vector.shape_cast %87 : vector<1x8x16x128xf32> to vector<8x16x128xf32>
    %89 = vector.shape_cast %86 : vector<8x16x128xf32> to vector<1x8x16x128xf32>
    tpu.vector_store %arg5[%c0_61, %c0_62, %c0_63, %c0_64], %89 {strides = array<i32>} : memref<1x8x16x128xf32, #tpu.memory_space<vmem>>, vector<1x8x16x128xf32>,
    return
  }
  func.func @transform_0(%arg0: i32, %arg1: i32) -> (i32, i32, i32, i32) {
    %c0_i32 = arith.constant 0 : i32
    %c0_i32_0 = arith.constant 0 : i32
    %c0_i32_1 = arith.constant 0 : i32
    %c0_i32_2 = arith.constant 0 : i32
    return %arg0, %c0_i32, %c0_i32_0, %c0_i32_1 : i32, i32, i32, i32
  }
  func.func @transform_1(%arg0: i32, %arg1: i32) -> (i32, i32, i32) {
    %c0_i32 = arith.constant 0 : i32
    %c0_i32_0 = arith.constant 0 : i32
    %c0_i32_1 = arith.constant 0 : i32
    %c0_i32_2 = arith.constant 0 : i32
    return %c0_i32, %c0_i32_0, %c0_i32_1 : i32, i32, i32
  }
  func.func @transform_2(%arg0: i32, %arg1: i32) -> (i32, i32) {
    %c0_i32 = arith.constant 0 : i32
    %c0_i32_0 = arith.constant 0 : i32
    %c0_i32_1 = arith.constant 0 : i32
    return %c0_i32, %c0_i32_0 : i32, i32
  }
  func.func @transform_3(%arg0: i32, %arg1: i32) -> (i32, i32, i32, i32) {
    %c0_i32 = arith.constant 0 : i32
    %c0_i32_0 = arith.constant 0 : i32
    %c0_i32_1 = arith.constant 0 : i32
    return %arg0, %arg1, %c0_i32, %c0_i32_0 : i32, i32, i32, i32
  }
}

</mosaic_0001>

<bundles_post_ra>
// kernel: tpu_custom_call.1
= control target key start
LH: loop header
LB: loop body
LE: loop exit
PB: predicated region body
PF: predicated region fallthrough
CT: control target
= control target key end

     0   :  { %8 = vsyncpa [#allocation3], 0  ;;  %s4104_s0 = inlined_call_operand.vmem [shape: f32[2,18,18,4], index: 0, kind: input, shape index: {}]   ;;  %s4105_s1 = inlined_call_operand.vmem [shape: f32[9,4,128], index: 1, kind: input, shape index: {}]   ;;  %s4106_s2 = inlined_call_operand.vmem [shape: f32[1,128], index: 2, kind: input, shape index: {}]   ;;  %s4107_s3 = inlined_call_operand.hbm [shape: f32[2,16,16,128], index: 3, kind: output, shape index: {}]  }
   0x1   :  { %10 = vsyncpa [#allocation3 + $0x1], 0  ;;  %s3249_s12 = smov 0   ;;  %s3251_s13 = smov 0  }
   0x2   :  { %s3253_s14 = smov 0   ;;  %s3255_s15 = smov 0  }
   0x3   :  { %s3257_s16 = smov 0   ;;  %s3259_s17 = smov 0  }
   0x4   :  { %s3261_s18 = smov 0   ;;  %s3263_s19 = smov 0  }
   0x5 LB: > { %s2390_s20 = sadd.s32 4294967295, %s3224_s19   ;;  %s2391_s21 = sadd.s32 4294967294, %s3224_s19   ;;  %s3224_s19 = sphi %s3263_s19, %s16_s19   ;;  %s3220_s18 = sphi %s3261_s18, %s4154_s18   ;;  %s3216_s17 = sphi %s3259_s17, %s4153_s17   ;;  %s3212_s16 = sphi %s3257_s16, %s4152_s16   ;;  %s3208_s15 = sphi %s3255_s15, %s4151_s15   ;;  %s3204_s14 = sphi %s3253_s14, %s4150_s14   ;;  %s3200_s13 = sphi %s3251_s13, %s4149_s13   ;;  %s3196_s12 = sphi %s3249_s12, %s4148_s12  }
   0x6   : > { %s25_s22 = sadd.s32 1, %s3216_s17  ;;  %s28_s23 = sadd.s32 1, %s3220_s18 }
   0x7   : > { %p26_p0 = scmp.ge.s32.totalorder %s25_s22, 2  ;;  %p115_p1 = scmp.ne.s32.totalorder %s3204_s14, %s3200_s13 }
   0x8   : > { %p116_p2 = scmp.eq.s32.totalorder %s2390_s20, 3  ;;  %p121_p5 = scmp.ne.s32.totalorder %s3200_s13, %s3196_s12 }
   0x9   : > { %s4156_s22 = smov (%p26_p0, %s25_s22), 0  ;;  %s4158_s23 = smov (!%p26_p0, %s28_s23), %s3220_s18 }
   0xa   : > { %s101_s24 = ssub.s32 %s3216_s17, %s4156_s22  ;;  %p3300_p3 = por %p116_p2, %p115_p1 }
   0xb   : > { %p30_p4 = scmp.ge.s32.totalorder %s4158_s23, 2  ;;  %p122_p6 = scmp.eq.s32.totalorder %s2391_s21, 3 }
   0xc   : > { %p2394_p7 = scmp.ge.s32.totalorder %s3224_s19, 1  ;;  %p154_p9 = scmp.lt.s32.totalorder %s3224_s19, 5 }
   0xd   : > { %s4160_s23 = smov (%p30_p4, %s4158_s23), 0  ;;  %p3309_p8 = por %p122_p6, %p121_p5 }
   0xe   : > { %s100_s27 = ssub.s32 %s3220_s18, %s4160_s23  ;;  %s105_s28 = sadd.s32 1, %s3204_s14 }
   0xf   : > { %s102_s29 = sor.u32 %s101_s24, %s100_s27  ;;  %p155_p10 = pnand %p2394_p7, %p154_p9 }
  0x10   : > { %p103_p11 = scmp.eq.s32.totalorder %s102_s29, 0 }
  0x11   : > { %158 = sbr.rel (%p155_p10) target bundleno = 386 (0x182), region = 32 }
  0x12   : > { %s3318_s30 = scalar_select %p103_p11, %s3204_s14, %s105_s28  }
  0x16   : > { %v210_v0 = vld [vmem:[%s4105_s1] sm:$0xf]  ;;  %vm260_vm0 = vcmask 1043456   ;;  %p178_p12 = scmp.lt.s32.totalorder %s3212_s16, 1  ;;  %v2417_v1 = vld [vmem:[%s4105_s1 + $0x4] sm:$0xf] }
  0x17   : > { %3056 = vmatprep.subr.msk.mxu1 %vm260_vm0, %v210_v0  ;;  %2822 = vmatprep.subr.msk.mxu0 %vm260_vm0, %v210_v0  ;;  %v2435_v2 = vld [vmem:[%s4105_s1 + $0x8] sm:$0xf]  ;;  %s2399_s11 = smul.u32 192, %s3208_s15  ;;  %vm211_vm1 = vcmask 31744   ;;  %v2471_v9 = vld [vmem:[%s4105_s1 + $0xc] sm:$0xf] }
  0x18   : > { %3057 = vmatpush3.msk.msra.mxu1 %vm260_vm0, %v210_v0  ;;  %2823 = vmatpush3.msk.msra.mxu0 %vm260_vm0, %v210_v0  ;;  %s179_s10 = scalar_select %p178_p12, %s3212_s16, 1  ;;  %v2505_v10 = vld [vmem:[%s4105_s1 + $0x10] sm:$0xf]  ;;  %v3444_v27 = vld [vmem:[%s4105_s1 + $0x14] sm:$0xf] }
  0x19   : > { %2848 = vmatprep.subr.msk.mxu1 %vm260_vm0, %v2417_v1  ;;  %2874 = vmatprep.subr.msk.mxu0 %vm260_vm0, %v2435_v2  ;;  %v3449_v28 = vld [vmem:[%s4105_s1 + $0x18] sm:$0xf]  ;;  %v2609_v55 = vld [vmem:[%s4105_s1 + $0x1c] sm:$0xf]  ;;  %v2643_v56 = vld [vmem:[%s4105_s1 + $0x20] sm:$0xf] }
  0x1a   : > { %s3058_s20 = smul.u32 432, %s179_s10  ;;  %s175_s29 = sand.u32 1, %s3200_s13  }
  0x1b   : > { %s2395_s4 = sshll.u32 %s175_s29, 7  ;;  %s2668_s6 = sshll.u32 %s3208_s15, 4 }
  0x1c   : > { %s182_s27 = scalar_lea.vmem %s4104_s0, %s3058_s20  ;;  %s3978_s5 = scalar_lea.vmem [#allocation2], %s2395_s4 }
  0x1d   : > { %s3341_s28 = scalar_lea.vmem %s182_s27, %s2399_s11  ;;  %s2664_s7 = sshll.u32 %s3212_s16, 5 }
  0x1e   : > { %v194_v3 = vld [vmem:[%s3341_s28] sm:$0xff]  ;;  %v195_v5 = vld [vmem:[%s3341_s28 + $0x8] sm:$0xff]  ;;  %v3355_v7 = vld [vmem:[%s3341_s28 + $0x18] sm:$0xff]  ;;  %s2301_s8 = sadd.s32 %s2668_s6, %s2664_s7  ;;  %s2304_s16 = sshll.u32 %s3978_s5, 4  ;;  %s4047_s16 = int_to_ptr.vmem [resolvable:$true] %s2304_s16 }
  0x1f   : > { %v3345_v4 = vld [vmem:[%s3341_s28 + $0x60] sm:$0xff]  ;;  %2824 = vmatprep.mubr.msk.f32.mxu0 %vm211_vm1, %v194_v3  ;;  %v3352_v6 = vld [vmem:[%s3341_s28 + $0x68] sm:$0xff]  ;;  %v3358_v8 = vld [vmem:[%s3341_s28 + $0x78] sm:$0xff]  ;;  %s2665_s15 = sshll.u32 %s2301_s8, 7  ;;  %s4053_s20 = scalar_lea.sflag [#allocation3], %s175_s29 }
  0x20   : > { %2836 = vmatprep.mubr.msk.f32.mxu1 %vm211_vm1, %v3345_v4  ;;  %2825 = vmatmul.mubr.msk.f32.vlgmr.msra.gmra.mxu0 %vm211_vm1, %v195_v5  ;;  %v3372_v11 = vld [vmem:[%s3341_s28 + $0x20] sm:$0xff]  ;;  %v3382_v13 = vld [vmem:[%s3341_s28 + $0x30] sm:$0xff]  ;;  %v3398_v15 = vld [vmem:[%s3341_s28 + $0x38] sm:$0xff]  ;;  %s4045_s11 = scalar_lea.hbm %s4107_s3, %s2665_s15  ;;  %s3132_s21 = scalar_lea.vmem %s4047_s16, 2048 }
  0x21   : > { %2837 = vmatmul.mubr.msk.f32.vlgmr.msra.gmra.mxu1 %vm211_vm1, %v3352_v6  ;;  %2875 = vmatpush3.msk.msra.mxu0 %vm260_vm0, %v2435_v2  ;;  %v3375_v12 = vld [vmem:[%s3341_s28 + $0x80] sm:$0xff]  ;;  %v3385_v14 = vld [vmem:[%s3341_s28 + $0x90] sm:$0xff]  ;;  %v3401_v16 = vld [vmem:[%s3341_s28 + $0x98] sm:$0xff]  ;;  %p3133_p13 = scmp.ne.s32.totalorder %s4047_s16, %s3132_s21  ;;  %s3226_s24 = smov [#allocation2]  }
  0x22   : > { %2849 = vmatpush3.msk.msra.mxu1 %vm260_vm0, %v2417_v1  ;;  %2827 = vmatprep.mubr.msk.f32.mxu0 %vm211_vm1, %v3355_v7  ;;  %v3404_v17 = vld [vmem:[%s3341_s28 + $0x48] sm:$0xff]  ;;  %v3418_v19 = vld [vmem:[%s3341_s28 + $0x50] sm:$0xff]  ;;  %v3434_v25 = vld [vmem:[%s3341_s28 + $0x19] sm:$0xff]  ;;  %s3136_s27 = sshll.u32 %s3226_s24, 4  ;;  %s3137_s27 = int_to_ptr.vmem [resolvable:$false] %s3136_s27 }
  0x23   : > { %2839 = vmatprep.mubr.msk.f32.mxu1 %vm211_vm1, %v3358_v8  ;;  %2900 = vmatprep.subr.msk.mxu1 %vm260_vm0, %v2471_v9  ;;  %v3407_v18 = vld [vmem:[%s3341_s28 + $0xa8] sm:$0xff]  ;;  %v3421_v20 = vld [vmem:[%s3341_s28 + $0xb0] sm:$0xff]  ;;  %v3437_v26 = vld [vmem:[%s3341_s28 + $0x1a] sm:$0xff]  ;;  %p3134_p0 = pnand %p3133_p13, %p3300_p3  ;;  %p3139_p2 = scmp.lt.s32.totalorder %s4047_s16, %s3137_s27 }
  0x24   : > { %2926 = vmatprep.subr.msk.mxu0 %vm260_vm0, %v2505_v10  ;;  %2828 = vmatmul.mubr.msk.f32.gmra.mxu0 %vm211_vm1, %v3372_v11  ;;  %v425_v21 = vld [vmem:[%s3341_s28 + $0x1] sm:$0xff]  ;;  %v426_v23 = vld [vmem:[%s3341_s28 + $0x9] sm:$0xff]  ;;  %v3462_v31 = vld [vmem:[%s3341_s28 + $0x31] sm:$0xff] }
  0x25   : > { %2840 = vmatmul.mubr.msk.f32.gmra.mxu1 %vm211_vm1, %v3375_v12  ;;  %2830 = vmatprep.mubr.msk.f32.mxu0 %vm211_vm1, %v3382_v13  ;;  %v655_v22 = vld [vmem:[%s3341_s28 + $0x2] sm:$0xff]  ;;  %v656_v24 = vld [vmem:[%s3341_s28 + $0xa] sm:$0xff]  ;;  %v3465_v32 = vld [vmem:[%s3341_s28 + $0x32] sm:$0xff]  ;;  %p3135_p1 = pneg %p3134_p0 }
  0x26   : > { %2842 = vmatprep.mubr.msk.f32.mxu1 %vm211_vm1, %v3385_v14  ;;  %v428_v29 = vld [vmem:[%s3341_s28 + $0x21] sm:$0xff]  ;;  %v3479_v33 = vld [vmem:[%s3341_s28 + $0x39] sm:$0xff]  ;;  %v3485_v35 = vld [vmem:[%s3341_s28 + $0x49] sm:$0xff] }
  0x27   : > { %v3455_v30 = vld [vmem:[%s3341_s28 + $0x22] sm:$0xff]  ;;  %v3482_v34 = vld [vmem:[%s3341_s28 + $0x3a] sm:$0xff]  ;;  %v3488_v36 = vld [vmem:[%s3341_s28 + $0x4a] sm:$0xff] }
  0x28   : > { %2831 = vmatmul.mubr.msk.f32.gmra.mxu0 %vm211_vm1, %v3398_v15  ;;  %v3499_v37 = vld [vmem:[%s3341_s28 + $0x51] sm:$0xff]  ;;  %v3505_v39 = vld [vmem:[%s3341_s28 + $0x61] sm:$0xff]  ;;  %v3519_v41 = vld [vmem:[%s3341_s28 + $0x69] sm:$0xff] }
  0x29   : > { %2843 = vmatmul.mubr.msk.f32.gmra.mxu1 %vm211_vm1, %v3401_v16  ;;  %2833 = vmatprep.mubr.msk.f32.mxu0 %vm211_vm1, %v3404_v17  ;;  %v3502_v38 = vld [vmem:[%s3341_s28 + $0x52] sm:$0xff]  ;;  %v3508_v40 = vld [vmem:[%s3341_s28 + $0x62] sm:$0xff]  ;;  %v3522_v42 = vld [vmem:[%s3341_s28 + $0x6a] sm:$0xff] }
  0x2a   : > { %2845 = vmatprep.mubr.msk.f32.mxu1 %vm211_vm1, %v3407_v18  ;;  %v3525_v43 = vld [vmem:[%s3341_s28 + $0x79] sm:$0xff]  ;;  %v3539_v45 = vld [vmem:[%s3341_s28 + $0x81] sm:$0xff]  ;;  %v3545_v47 = vld [vmem:[%s3341_s28 + $0x91] sm:$0xff] }
  0x2b   : > { %v3528_v44 = vld [vmem:[%s3341_s28 + $0x7a] sm:$0xff]  ;;  %v3542_v46 = vld [vmem:[%s3341_s28 + $0x82] sm:$0xff]  ;;  %v3548_v48 = vld [vmem:[%s3341_s28 + $0x92] sm:$0xff] }
  0x2c   : > { %2834 = vmatmul.mubr.msk.f32.gmra.mxu0 %vm211_vm1, %v3418_v19  ;;  %v3559_v49 = vld [vmem:[%s3341_s28 + $0x99] sm:$0xff]  ;;  %v3565_v51 = vld [vmem:[%s3341_s28 + $0xa9] sm:$0xff]  ;;  %v3579_v53 = vld [vmem:[%s3341_s28 + $0xb1] sm:$0xff] }
  0x2d   : > { %2846 = vmatmul.mubr.msk.f32.gmra.mxu1 %vm211_vm1, %v3421_v20  ;;  %2876 = vmatprep.mubr.msk.f32.mxu0 %vm211_vm1, %v655_v22  ;;  %v3562_v50 = vld [vmem:[%s3341_s28 + $0x9a] sm:$0xff]  ;;  %v3568_v52 = vld [vmem:[%s3341_s28 + $0xaa] sm:$0xff]  ;;  %v3582_v54 = vld [vmem:[%s3341_s28 + $0xb2] sm:$0xff] }
  0x2e   : > { %2850 = vmatprep.mubr.msk.f32.mxu1 %vm211_vm1, %v425_v21  ;;  %v2469_v57 = vld [vmem:[%s3341_s28 + $0xc0] sm:$0xff]  ;;  %v2470_v59 = vld [vmem:[%s3341_s28 + $0xc8] sm:$0xff]  ;;  %v2573_v62 = vld [vmem:[%s3341_s28 + $0xd8] sm:$0xff] }
  0x2f   : > { %v3653_v58 = vld [vmem:[%s3341_s28 + $0xc1] sm:$0xff]  ;;  %v3664_v60 = vld [vmem:[%s3341_s28 + $0xc9] sm:$0xff]  ;;  %v2607_v1 = vld [vmem:[%s3341_s28 + $0xd9] sm:$0xff] }
  0x30   : > { %2877 = vmatmul.mubr.msk.f32.vlgmr.msra.gmra.mxu0 %vm211_vm1, %v656_v24  ;;  %v2537_v61 = vld [vmem:[%s3341_s28 + $0xc2] sm:$0xff]  ;;  %v2538_v63 = vld [vmem:[%s3341_s28 + $0xca] sm:$0xff]  ;;  %v2641_v2 = vld [vmem:[%s3341_s28 + $0xda] sm:$0xff] }
  0x31   : > { %2851 = vmatmul.mubr.msk.f32.vlgmr.msra.gmra.mxu1 %vm211_vm1, %v426_v23  ;;  %2927 = vmatpush3.msk.msra.mxu0 %vm260_vm0, %v2505_v10  ;;  %v2574_v0 = vld [vmem:[%s3341_s28 + $0xe0] sm:$0xff] }
  0x32   : > { %2901 = vmatpush3.msk.msra.mxu1 %vm260_vm0, %v2471_v9  ;;  %2853 = vmatprep.mubr.msk.f32.mxu1 %vm211_vm1, %v3434_v25  ;;  %v2608_v3 = vld [vmem:[%s3341_s28 + $0xe1] sm:$0xff] }
  0x33   : > { %2879 = vmatprep.mubr.msk.f32.mxu0 %vm211_vm1, %v3437_v26  ;;  %2952 = vmatprep.subr.msk.mxu1 %vm260_vm0, %v3444_v27 }
  0x34   : > { %2978 = vmatprep.subr.msk.mxu0 %vm260_vm0, %v3449_v28  ;;  %2880 = vmatmul.mubr.msk.f32.gmra.mxu0 %vm211_vm1, %v3455_v30 }
  0x35   : > { %2854 = vmatmul.mubr.msk.f32.gmra.mxu1 %vm211_vm1, %v428_v29  ;;  %2882 = vmatprep.mubr.msk.f32.mxu0 %vm211_vm1, %v3465_v32 }
  0x36   : > { %2856 = vmatprep.mubr.msk.f32.mxu1 %vm211_vm1, %v3462_v31 }
  0x38   : > { %2883 = vmatmul.mubr.msk.f32.gmra.mxu0 %vm211_vm1, %v3482_v34 }
  0x39   : > { %2857 = vmatmul.mubr.msk.f32.gmra.mxu1 %vm211_vm1, %v3479_v33  ;;  %2885 = vmatprep.mubr.msk.f32.mxu0 %vm211_vm1, %v3488_v36 }
  0x3a   : > { %2859 = vmatprep.mubr.msk.f32.mxu1 %vm211_vm1, %v3485_v35 }
  0x3c   : > { %2886 = vmatmul.mubr.msk.f32.gmra.mxu0 %vm211_vm1, %v3502_v38 }
  0x3d   : > { %2860 = vmatmul.mubr.msk.f32.gmra.mxu1 %vm211_vm1, %v3499_v37  ;;  %2888 = vmatprep.mubr.msk.f32.mxu0 %vm211_vm1, %v3508_v40 }
  0x3e   : > { %2862 = vmatprep.mubr.msk.f32.mxu1 %vm211_vm1, %v3505_v39 }
  0x40   : > { %2889 = vmatmul.mubr.msk.f32.gmra.mxu0 %vm211_vm1, %v3522_v42 }
  0x41   : > { %2863 = vmatmul.mubr.msk.f32.gmra.mxu1 %vm211_vm1, %v3519_v41  ;;  %2891 = vmatprep.mubr.msk.f32.mxu0 %vm211_vm1, %v3528_v44 }
  0x42   : > { %2865 = vmatprep.mubr.msk.f32.mxu1 %vm211_vm1, %v3525_v43 }
  0x44   : > { %2892 = vmatmul.mubr.msk.f32.gmra.mxu0 %vm211_vm1, %v3542_v46 }
  0x45   : > { %2866 = vmatmul.mubr.msk.f32.gmra.mxu1 %vm211_vm1, %v3539_v45  ;;  %2894 = vmatprep.mubr.msk.f32.mxu0 %vm211_vm1, %v3548_v48 }
  0x46   : > { %2868 = vmatprep.mubr.msk.f32.mxu1 %vm211_vm1, %v3545_v47 }
  0x48   : > { %2895 = vmatmul.mubr.msk.f32.gmra.mxu0 %vm211_vm1, %v3562_v50 }
  0x49   : > { %2869 = vmatmul.mubr.msk.f32.gmra.mxu1 %vm211_vm1, %v3559_v49  ;;  %2897 = vmatprep.mubr.msk.f32.mxu0 %vm211_vm1, %v3568_v52 }
  0x4a   : > { %2871 = vmatprep.mubr.msk.f32.mxu1 %vm211_vm1, %v3565_v51 }
  0x4c   : > { %2898 = vmatmul.mubr.msk.f32.gmra.mxu0 %vm211_vm1, %v3582_v54 }
  0x4d   : > { %2872 = vmatmul.mubr.msk.f32.gmra.mxu1 %vm211_vm1, %v3579_v53  ;;  %2928 = vmatprep.mubr.msk.f32.mxu0 %vm211_vm1, %v3434_v25 }
  0x4e   : > { %2902 = vmatprep.mubr.msk.f32.mxu1 %vm211_vm1, %v3355_v7 }
  0x50   : > { %2929 = vmatmul.mubr.msk.f32.vlgmr.msra.gmra.mxu0 %vm211_vm1, %v428_v29 }
  0x51   : > { %2903 = vmatmul.mubr.msk.f32.vlgmr.msra.gmra.mxu1 %vm211_vm1, %v3372_v11  ;;  %2979 = vmatpush3.msk.msra.mxu0 %vm260_vm0, %v3449_v28 }
  0x52   : > { %2953 = vmatpush3.msk.msra.mxu1 %vm260_vm0, %v3444_v27  ;;  %2905 = vmatprep.mubr.msk.f32.mxu1 %vm211_vm1, %v3382_v13 }
  0x53   : > { %2931 = vmatprep.mubr.msk.f32.mxu0 %vm211_vm1, %v3462_v31  ;;  %3004 = vmatprep.subr.msk.mxu1 %vm260_vm0, %v2609_v55 }
  0x54   : > { %3030 = vmatprep.subr.msk.mxu0 %vm260_vm0, %v2643_v56  ;;  %2932 = vmatmul.mubr.msk.f32.gmra.mxu0 %vm211_vm1, %v3479_v33 }
  0x55   : > { %2906 = vmatmul.mubr.msk.f32.gmra.mxu1 %vm211_vm1, %v3398_v15  ;;  %2934 = vmatprep.mubr.msk.f32.mxu0 %vm211_vm1, %v3485_v35 }
  0x56   : > { %2908 = vmatprep.mubr.msk.f32.mxu1 %vm211_vm1, %v3404_v17 }
  0x58   : > { %2935 = vmatmul.mubr.msk.f32.gmra.mxu0 %vm211_vm1, %v3499_v37 }
  0x59   : > { %2909 = vmatmul.mubr.msk.f32.gmra.mxu1 %vm211_vm1, %v3418_v19  ;;  %2937 = vmatprep.mubr.msk.f32.mxu0 %vm211_vm1, %v3505_v39 }
  0x5a   : > { %2911 = vmatprep.mubr.msk.f32.mxu1 %vm211_vm1, %v3345_v4 }
  0x5c   : > { %2938 = vmatmul.mubr.msk.f32.gmra.mxu0 %vm211_vm1, %v3519_v41 }
  0x5d   : > { %2912 = vmatmul.mubr.msk.f32.gmra.mxu1 %vm211_vm1, %v3352_v6  ;;  %2940 = vmatprep.mubr.msk.f32.mxu0 %vm211_vm1, %v3525_v43 }
  0x5e   : > { %2914 = vmatprep.mubr.msk.f32.mxu1 %vm211_vm1, %v3358_v8 }
  0x60   : > { %2941 = vmatmul.mubr.msk.f32.gmra.mxu0 %vm211_vm1, %v3539_v45 }
  0x61   : > { %2915 = vmatmul.mubr.msk.f32.gmra.mxu1 %vm211_vm1, %v3375_v12  ;;  %2943 = vmatprep.mubr.msk.f32.mxu0 %vm211_vm1, %v3545_v47 }
  0x62   : > { %2917 = vmatprep.mubr.msk.f32.mxu1 %vm211_vm1, %v3385_v14 }
  0x64   : > { %2944 = vmatmul.mubr.msk.f32.gmra.mxu0 %vm211_vm1, %v3559_v49 }
  0x65   : > { %2918 = vmatmul.mubr.msk.f32.gmra.mxu1 %vm211_vm1, %v3401_v16  ;;  %2946 = vmatprep.mubr.msk.f32.mxu0 %vm211_vm1, %v3565_v51 }
  0x66   : > { %2920 = vmatprep.mubr.msk.f32.mxu1 %vm211_vm1, %v3407_v18 }
  0x68   : > { %2947 = vmatmul.mubr.msk.f32.gmra.mxu0 %vm211_vm1, %v3579_v53 }
  0x69   : > { %2921 = vmatmul.mubr.msk.f32.gmra.mxu1 %vm211_vm1, %v3421_v20  ;;  %2949 = vmatprep.mubr.msk.f32.mxu0 %vm211_vm1, %v3653_v58 }
  0x6a   : > { %2923 = vmatprep.mubr.msk.f32.mxu1 %vm211_vm1, %v2469_v57 }
  0x6c   : > { %2950 = vmatmul.mubr.msk.f32.gmra.mxu0 %vm211_vm1, %v3664_v60 }
  0x6d   : > { %2924 = vmatmul.mubr.msk.f32.gmra.mxu1 %vm211_vm1, %v2470_v59  ;;  %2980 = vmatprep.mubr.msk.f32.mxu0 %vm211_vm1, %v3382_v13 }
  0x6e   : > { %2954 = vmatprep.mubr.msk.f32.mxu1 %vm211_vm1, %v3437_v26 }
  0x70   : > { %2981 = vmatmul.mubr.msk.f32.vlgmr.msra.gmra.mxu0 %vm211_vm1, %v3398_v15 }
  0x71   : > { %2955 = vmatmul.mubr.msk.f32.vlgmr.msra.gmra.mxu1 %vm211_vm1, %v3455_v30  ;;  %3031 = vmatpush3.msk.msra.mxu0 %vm260_vm0, %v2643_v56 }
  0x72   : > { %3005 = vmatpush3.msk.msra.mxu1 %vm260_vm0, %v2609_v55  ;;  %2957 = vmatprep.mubr.msk.f32.mxu1 %vm211_vm1, %v3465_v32 }
  0x73   : > { %2983 = vmatprep.mubr.msk.f32.mxu0 %vm211_vm1, %v3404_v17 }
  0x74   : > { %2984 = vmatmul.mubr.msk.f32.gmra.mxu0 %vm211_vm1, %v3418_v19  ;;  %v3804_v19 = vld [vmem:[%s4106_s2] ss:$0 sm:$0xff] }
  0x75   : > { %2958 = vmatmul.mubr.msk.f32.gmra.mxu1 %vm211_vm1, %v3482_v34  ;;  %2986 = vmatprep.mubr.msk.f32.mxu0 %vm211_vm1, %v3345_v4  ;;  %v2642_v4 = vld [vmem:[%s3341_s28 + $0xe2] sm:$0xff]  ;;  %s3138_s28 = scalar_lea.vmem %s3137_s27, 4096 }
  0x76   : > { %2960 = vmatprep.mubr.msk.f32.mxu1 %vm211_vm1, %v3488_v36  ;;  %p3140_p4 = scmp.lt.s32.totalorder %s3138_s28, %s3132_s21 }
  0x78   : > { %2987 = vmatmul.mubr.msk.f32.gmra.mxu0 %vm211_vm1, %v3352_v6  ;;  %p3141_p5 = por %p3140_p4, %p3139_p2 }
  0x79   : > { %2961 = vmatmul.mubr.msk.f32.gmra.mxu1 %vm211_vm1, %v3502_v38  ;;  %2989 = vmatprep.mubr.msk.f32.mxu0 %vm211_vm1, %v3358_v8 }
  0x7a   : > { %2963 = vmatprep.mubr.msk.f32.mxu1 %vm211_vm1, %v3508_v40  ;;  %p3142_p6 = pnand %p3141_p5, %p3135_p1 }
  0x7c   : > { %2990 = vmatmul.mubr.msk.f32.gmra.mxu0 %vm211_vm1, %v3375_v12 }
  0x7d   : > { %2964 = vmatmul.mubr.msk.f32.gmra.mxu1 %vm211_vm1, %v3522_v42  ;;  %2992 = vmatprep.mubr.msk.f32.mxu0 %vm211_vm1, %v3385_v14 }
  0x7e   : > { %2966 = vmatprep.mubr.msk.f32.mxu1 %vm211_vm1, %v3528_v44 }
  0x80   : > { %2993 = vmatmul.mubr.msk.f32.gmra.mxu0 %vm211_vm1, %v3401_v16 }
  0x81   : > { %2967 = vmatmul.mubr.msk.f32.gmra.mxu1 %vm211_vm1, %v3542_v46  ;;  %2995 = vmatprep.mubr.msk.f32.mxu0 %vm211_vm1, %v3407_v18 }
  0x82   : > { %2969 = vmatprep.mubr.msk.f32.mxu1 %vm211_vm1, %v3548_v48 }
  0x84   : > { %2996 = vmatmul.mubr.msk.f32.gmra.mxu0 %vm211_vm1, %v3421_v20 }
  0x85   : > { %2970 = vmatmul.mubr.msk.f32.gmra.mxu1 %vm211_vm1, %v3562_v50  ;;  %2998 = vmatprep.mubr.msk.f32.mxu0 %vm211_vm1, %v2469_v57 }
  0x86   : > { %2972 = vmatprep.mubr.msk.f32.mxu1 %vm211_vm1, %v3568_v52 }
  0x88   : > { %2999 = vmatmul.mubr.msk.f32.gmra.mxu0 %vm211_vm1, %v2470_v59 }
  0x89   : > { %2973 = vmatmul.mubr.msk.f32.gmra.mxu1 %vm211_vm1, %v3582_v54  ;;  %3001 = vmatprep.mubr.msk.f32.mxu0 %vm211_vm1, %v2573_v62 }
  0x8a   : > { %2975 = vmatprep.mubr.msk.f32.mxu1 %vm211_vm1, %v2537_v61 }
  0x8c   : > { %3002 = vmatmul.mubr.msk.f32.gmra.mxu0 %vm211_vm1, %v2574_v0 }
  0x8d   : > { %2976 = vmatmul.mubr.msk.f32.gmra.mxu1 %vm211_vm1, %v2538_v63  ;;  %3032 = vmatprep.mubr.msk.f32.mxu0 %vm211_vm1, %v3465_v32 }
  0x8e   : > { %3006 = vmatprep.mubr.msk.f32.mxu1 %vm211_vm1, %v3462_v31 }
  0x90   : > { %3033 = vmatmul.mubr.msk.f32.vlgmr.msra.gmra.mxu0 %vm211_vm1, %v3482_v34 }
  0x91   : > { %3007 = vmatmul.mubr.msk.f32.vlgmr.msra.gmra.mxu1 %vm211_vm1, %v3479_v33  ;;  %3035 = vmatprep.mubr.msk.f32.mxu0 %vm211_vm1, %v3488_v36 }
  0x92   : > { %3009 = vmatprep.mubr.msk.f32.mxu1 %vm211_vm1, %v3485_v35 }
  0x94   : > { %3036 = vmatmul.mubr.msk.f32.gmra.mxu0 %vm211_vm1, %v3502_v38 }
  0x95   : > { %3010 = vmatmul.mubr.msk.f32.gmra.mxu1 %vm211_vm1, %v3499_v37  ;;  %3038 = vmatprep.mubr.msk.f32.mxu0 %vm211_vm1, %v3508_v40 }
  0x96   : > { %3012 = vmatprep.mubr.msk.f32.mxu1 %vm211_vm1, %v3505_v39 }
  0x98   : > { %3039 = vmatmul.mubr.msk.f32.gmra.mxu0 %vm211_vm1, %v3522_v42 }
  0x99   : > { %3013 = vmatmul.mubr.msk.f32.gmra.mxu1 %vm211_vm1, %v3519_v41  ;;  %3041 = vmatprep.mubr.msk.f32.mxu0 %vm211_vm1, %v3528_v44 }
  0x9a   : > { %3015 = vmatprep.mubr.msk.f32.mxu1 %vm211_vm1, %v3525_v43 }
  0x9c   : > { %3042 = vmatmul.mubr.msk.f32.gmra.mxu0 %vm211_vm1, %v3542_v46 }
  0x9d   : > { %3016 = vmatmul.mubr.msk.f32.gmra.mxu1 %vm211_vm1, %v3539_v45  ;;  %3044 = vmatprep.mubr.msk.f32.mxu0 %vm211_vm1, %v3548_v48 }
  0x9e   : > { %3018 = vmatprep.mubr.msk.f32.mxu1 %vm211_vm1, %v3545_v47 }
  0xa0   : > { %3045 = vmatmul.mubr.msk.f32.gmra.mxu0 %vm211_vm1, %v3562_v50 }
  0xa1   : > { %3019 = vmatmul.mubr.msk.f32.gmra.mxu1 %vm211_vm1, %v3559_v49  ;;  %3047 = vmatprep.mubr.msk.f32.mxu0 %vm211_vm1, %v3568_v52 }
  0xa2   : > { %3021 = vmatprep.mubr.msk.f32.mxu1 %vm211_vm1, %v3565_v51 }
  0xa4   : > { %3048 = vmatmul.mubr.msk.f32.gmra.mxu0 %vm211_vm1, %v3582_v54 }
  0xa5   : > { %3022 = vmatmul.mubr.msk.f32.gmra.mxu1 %vm211_vm1, %v3579_v53  ;;  %3050 = vmatprep.mubr.msk.f32.mxu0 %vm211_vm1, %v2537_v61 }
  0xa6   : > { %3024 = vmatprep.mubr.msk.f32.mxu1 %vm211_vm1, %v3653_v58 }
  0xa8   : > { %3051 = vmatmul.mubr.msk.f32.gmra.mxu0 %vm211_vm1, %v2538_v63 }
  0xa9   : > { %3025 = vmatmul.mubr.msk.f32.gmra.mxu1 %vm211_vm1, %v3664_v60  ;;  %3053 = vmatprep.mubr.msk.f32.mxu0 %vm211_vm1, %v2641_v2 }
  0xaa   : > { %3027 = vmatprep.mubr.msk.f32.mxu1 %vm211_vm1, %v2607_v1 }
  0xac   : > { %3054 = vmatmul.mubr.msk.f32.gmra.mxu0 %vm211_vm1, %v2642_v4 }
  0xad   : > { %3028 = vmatmul.mubr.msk.f32.gmra.mxu1 %vm211_vm1, %v2608_v3 }
  0xe0   : > { %v2826_v5 = vpop.f32.mrf.mxu0 }
  0xe1   : > { %v2838_v6 = vpop.f32.mrf.mxu1  ;;  %v410_v22 = vadd.f32 %v2826_v5, %v3804_v19 }
  0xe2   : > { %v330_v7 = vpop.f32.mrf.mxu0  ;;  %v418_v59 = vadd.f32 %v2838_v6, %v3804_v19 }
  0xe3   : > { %v370_v8 = vpop.f32.mrf.mxu1  ;;  %v409_v25 = vadd.f32 %v3804_v19, %v330_v7 }
  0xe4   : > { %v2829_v9 = vpop.f32.mrf.mxu0  ;;  %v417_v0 = vadd.f32 %v3804_v19, %v370_v8 }
  0xe5   : > { %v2841_v10 = vpop.f32.mrf.mxu1  ;;  %v412_v29 = vadd.f32 %v2829_v9, %v3804_v19 }
  0xe6   : > { %v340_v11 = vpop.f32.mrf.mxu0  ;;  %v420_v5 = vadd.f32 %v2841_v10, %v3804_v19 }
  0xe7   : > { %v380_v12 = vpop.f32.mrf.mxu1  ;;  %v411_v34 = vadd.f32 %v3804_v19, %v340_v11 }
  0xe8   : > { %v2832_v13 = vpop.f32.mrf.mxu0  ;;  %v419_v6 = vadd.f32 %v3804_v19, %v380_v12 }
  0xe9   : > { %v3795_v14 = vpop.f32.mrf.mxu1  ;;  %v414_v39 = vadd.f32 %v2832_v13, %v3804_v19 }
  0xea   : > { %v350_v15 = vpop.f32.mrf.mxu0  ;;  %v422_v8 = vadd.f32 %v3795_v14, %v3804_v19 }
  0xeb   : > { %v3797_v16 = vpop.f32.mrf.mxu1  ;;  %v413_v44 = vadd.f32 %v3804_v19, %v350_v15 }
  0xec   : > { %v2835_v17 = vpop.f32.mrf.mxu0 }
  0xed   : > { %v3799_v18 = vpop.f32.mrf.mxu1  ;;  %v416_v49 = vadd.f32 %v2835_v17, %v3804_v19 }
  0xee   : > { %v360_v20 = vpop.f32.mrf.mxu0 }
  0xef   : > { %v3806_v21 = vpop.f32.mrf.mxu1  ;;  %v415_v54 = vadd.f32 %v3804_v19, %v360_v20 }
  0xf0   : > { %v2878_v24 = vpop.f32.mrf.mxu0 }
  0xf1   : > { %v2852_v23 = vpop.f32.mrf.mxu1 }
  0xf2   : > { %v640_v26 = vadd.f32 %v2852_v23, %v410_v22  ;;  %v790_v28 = vpop.f32.mrf.mxu0 }
  0xf3   : > { %v560_v27 = vpop.f32.mrf.mxu1 }
  0xf4   : > { %v3811_v30 = vadd.f32 %v2878_v24, %v640_v26  ;;  %v639_v31 = vadd.f32 %v560_v27, %v409_v25  ;;  %v2881_v33 = vpop.f32.mrf.mxu0  ;;  %v421_v26 = vadd.f32 %v3804_v19, %v3797_v16 }
  0xf5   : > { %v2855_v32 = vpop.f32.mrf.mxu1 }
  0xf6   : > { %v3814_v35 = vadd.f32 %v790_v28, %v639_v31  ;;  %v642_v36 = vadd.f32 %v2855_v32, %v412_v29  ;;  %v800_v38 = vpop.f32.mrf.mxu0  ;;  %v424_v31 = vadd.f32 %v3799_v18, %v3804_v19 }
  0xf7   : > { %v570_v37 = vpop.f32.mrf.mxu1 }
  0xf8   : > { %v3817_v40 = vadd.f32 %v2881_v33, %v642_v36  ;;  %v641_v41 = vadd.f32 %v570_v37, %v411_v34  ;;  %v2884_v43 = vpop.f32.mrf.mxu0  ;;  %v423_v36 = vadd.f32 %v3804_v19, %v3806_v21 }
  0xf9   : > { %v2858_v42 = vpop.f32.mrf.mxu1 }
  0xfa   : > { %v3820_v45 = vadd.f32 %v800_v38, %v641_v41  ;;  %v644_v46 = vadd.f32 %v2858_v42, %v414_v39  ;;  %v810_v48 = vpop.f32.mrf.mxu0 }
  0xfb   : > { %v580_v47 = vpop.f32.mrf.mxu1 }
  0xfc   : > { %v3823_v50 = vadd.f32 %v2884_v43, %v644_v46  ;;  %v643_v51 = vadd.f32 %v580_v47, %v413_v44  ;;  %v2887_v53 = vpop.f32.mrf.mxu0 }
  0xfd   : > { %v2861_v52 = vpop.f32.mrf.mxu1 }
  0xfe   : > { %v3826_v55 = vadd.f32 %v810_v48, %v643_v51  ;;  %v646_v56 = vadd.f32 %v2861_v52, %v416_v49  ;;  %v820_v58 = vpop.f32.mrf.mxu0 }
  0xff   : > { %v590_v57 = vpop.f32.mrf.mxu1 }
 0x100   : > { %v3829_v60 = vadd.f32 %v2887_v53, %v646_v56  ;;  %v645_v61 = vadd.f32 %v590_v57, %v415_v54  ;;  %v2890_v63 = vpop.f32.mrf.mxu0 }
 0x101   : > { %v2864_v62 = vpop.f32.mrf.mxu1 }
 0x102   : > { %v3832_v1 = vadd.f32 %v820_v58, %v645_v61  ;;  %v648_v2 = vadd.f32 %v2864_v62, %v418_v59  ;;  %v830_v4 = vpop.f32.mrf.mxu0 }
 0x103   : > { %v600_v3 = vpop.f32.mrf.mxu1 }
 0x104   : > { %v3835_v7 = vadd.f32 %v2890_v63, %v648_v2  ;;  %v647_v9 = vadd.f32 %v600_v3, %v417_v0  ;;  %v2893_v13 = vpop.f32.mrf.mxu0 }
 0x105   : > { %v2867_v11 = vpop.f32.mrf.mxu1 }
 0x106   : > { %v3838_v15 = vadd.f32 %v830_v4, %v647_v9  ;;  %v650_v17 = vadd.f32 %v2867_v11, %v420_v5  ;;  %v840_v22 = vpop.f32.mrf.mxu0 }
 0x107   : > { %v610_v20 = vpop.f32.mrf.mxu1 }
 0x108   : > { %v3842_v23 = vadd.f32 %v2893_v13, %v650_v17  ;;  %v649_v24 = vadd.f32 %v610_v20, %v419_v6  ;;  %v2896_v10 = vpop.f32.mrf.mxu0 }
 0x109   : > { %v2870_v25 = vpop.f32.mrf.mxu1 }
 0x10a   : > { %v3846_v27 = vadd.f32 %v840_v22, %v649_v24  ;;  %v652_v28 = vadd.f32 %v2870_v25, %v422_v8  ;;  %v850_v29 = vpop.f32.mrf.mxu0 }
 0x10b   : > { %v620_v12 = vpop.f32.mrf.mxu1 }
 0x10c   : > { %v3850_v32 = vadd.f32 %v2896_v10, %v652_v28  ;;  %v651_v33 = vadd.f32 %v620_v12, %v421_v26  ;;  %v2899_v34 = vpop.f32.mrf.mxu0 }
 0x10d   : > { %v2873_v14 = vpop.f32.mrf.mxu1 }
 0x10e   : > { %v3854_v37 = vadd.f32 %v850_v29, %v651_v33  ;;  %v654_v38 = vadd.f32 %v2873_v14, %v424_v31  ;;  %v860_v39 = vpop.f32.mrf.mxu0 }
 0x10f   : > { %v630_v16 = vpop.f32.mrf.mxu1 }
 0x110   : > { %4110 = vst [vmem:[#allocation5_spill] sm:$0xff] %v3854_v37  ;;  %v3856_v41 = vadd.f32 %v2899_v34, %v654_v38  ;;  %v653_v42 = vadd.f32 %v630_v16, %v423_v36  ;;  %v2930_v44 = vpop.f32.mrf.mxu0 }
 0x111   : > { %v2904_v43 = vpop.f32.mrf.mxu1 }
 0x112   : > { %4111 = vst [vmem:[#allocation6_spill] sm:$0xff] %v3856_v41  ;;  %v3858_v46 = vadd.f32 %v860_v39, %v653_v42  ;;  %v1253_v47 = vpop.f32.mrf.mxu0  ;;  %v1103_v41 = vadd.f32 %v2904_v43, %v3811_v30 }
 0x113   : > { %v1023_v18 = vpop.f32.mrf.mxu1 }
 0x114   : > { %4112 = vst [vmem:[#allocation7_spill] sm:$0xff] %v3858_v46  ;;  %v3860_v49 = vpop.f32.mrf.mxu0  ;;  %v1102_v37 = vadd.f32 %v1023_v18, %v3814_v35 }
 0x115   : > { %v2907_v48 = vpop.f32.mrf.mxu1 }
 0x116   : > { %v3862_v52 = vpop.f32.mrf.mxu0 }
 0x117   : > { %v1033_v51 = vpop.f32.mrf.mxu1 }
 0x118   : > { %v3866_v21 = vpop.f32.mrf.mxu0  ;;  %v1104_v30 = vadd.f32 %v1033_v51, %v3820_v45 }
 0x119   : > { %v3864_v19 = vpop.f32.mrf.mxu1 }
 0x11a   : > { %v3870_v54 = vpop.f32.mrf.mxu0  ;;  %v1334_v45 = vadd.f32 %v3862_v52, %v1104_v30 }
 0x11b   : > { %v3868_v53 = vpop.f32.mrf.mxu1 }
 0x11c   : > { %v3874_v57 = vpop.f32.mrf.mxu0 }
 0x11d   : > { %v3872_v56 = vpop.f32.mrf.mxu1 }
 0x11e   : > { %v3878_v59 = vpop.f32.mrf.mxu0 }
 0x11f   : > { %v3876_v58 = vpop.f32.mrf.mxu1 }
 0x120   : > { %v3882_v62 = vpop.f32.mrf.mxu0 }
 0x121   : > { %v3880_v61 = vpop.f32.mrf.mxu1 }
 0x122   : > { %v3886_v0 = vpop.f32.mrf.mxu0 }
 0x123   : > { %v3884_v63 = vpop.f32.mrf.mxu1 }
 0x124   : > { %v3890_v3 = vpop.f32.mrf.mxu0 }
 0x125   : > { %v3888_v2 = vpop.f32.mrf.mxu1 }
 0x126   : > { %v3894_v5 = vpop.f32.mrf.mxu0 }
 0x127   : > { %v3892_v4 = vpop.f32.mrf.mxu1  ;;  %4113 = vst [vmem:[#allocation8_spill] sm:$0xff] %v3894_v5 }
 0x128   : > { %v3898_v11 = vpop.f32.mrf.mxu0 }
 0x129   : > { %v3896_v9 = vpop.f32.mrf.mxu1  ;;  %4114 = vst [vmem:[#allocation9_spill] sm:$0xff] %v3898_v11 }
 0x12a   : > { %v3902_v6 = vpop.f32.mrf.mxu0 }
 0x12b   : > { %v3900_v13 = vpop.f32.mrf.mxu1  ;;  %4116 = vst [vmem:[#allocation11_spill] sm:$0xff] %v3902_v6 }
 0x12c   : > { %4115 = vst [vmem:[#allocation10_spill] sm:$0xff] %v3900_v13  ;;  %v3906_v20 = vpop.f32.mrf.mxu0 }
 0x12d   : > { %v3904_v17 = vpop.f32.mrf.mxu1  ;;  %4118 = vst [vmem:[#allocation13_spill] sm:$0xff] %v3906_v20 }
 0x12e   : > { %4117 = vst [vmem:[#allocation12_spill] sm:$0xff] %v3904_v17  ;;  %v3910_v8 = vpop.f32.mrf.mxu0 }
 0x12f   : > { %v3908_v22 = vpop.f32.mrf.mxu1  ;;  %4120 = vst [vmem:[#allocation15_spill] sm:$0xff] %v3910_v8 }
 0x130   : > { %4119 = vst [vmem:[#allocation14_spill] sm:$0xff] %v3908_v22  ;;  %v2982_v25 = vpop.f32.mrf.mxu0 }
 0x131   : > { %v2956_v24 = vpop.f32.mrf.mxu1 }
 0x132   : > { %v1716_v26 = vpop.f32.mrf.mxu0 }
 0x133   : > { %v1483_v10 = vpop.f32.mrf.mxu1 }
 0x134   : > { %v2985_v12 = vpop.f32.mrf.mxu0 }
 0x135   : > { %v2959_v28 = vpop.f32.mrf.mxu1 }
 0x136   : > { %v1726_v31 = vpop.f32.mrf.mxu0 }
 0x137   : > { %v1493_v29 = vpop.f32.mrf.mxu1 }
 0x138   : > { %v3912_v14 = vpop.f32.mrf.mxu0 }
 0x139   : > { %v2962_v33 = vpop.f32.mrf.mxu1 }
 0x13a   : > { %v3914_v36 = vpop.f32.mrf.mxu0 }
 0x13b   : > { %v1503_v34 = vpop.f32.mrf.mxu1 }
 0x13c   : > { %v3918_v16 = vpop.f32.mrf.mxu0 }
 0x13d   : > { %v3916_v38 = vpop.f32.mrf.mxu1 }
 0x13e   : > { %v3922_v42 = vpop.f32.mrf.mxu0 }
 0x13f   : > { %v3920_v39 = vpop.f32.mrf.mxu1  ;;  %4121 = vst [vmem:[#allocation16_spill] sm:$0xff] %v3922_v42 }
 0x140   : > { %v3926_v20 = vpop.f32.mrf.mxu0 }
 0x141   : > { %v3924_v8 = vpop.f32.mrf.mxu1  ;;  %4122 = vst [vmem:[#allocation17_spill] sm:$0xff] %v3926_v20 }
 0x142   : > { %v3930_v46 = vpop.f32.mrf.mxu0 }
 0x143   : > { %v3928_v22 = vpop.f32.mrf.mxu1  ;;  %4124 = vst [vmem:[#allocation19_spill] sm:$0xff] %v3930_v46  ;;  %v1105_v46 = vadd.f32 %v2907_v48, %v3817_v40 }
 0x144   : > { %4123 = vst [vmem:[#allocation18_spill] sm:$0xff] %v3928_v22  ;;  %v3934_v17 = vpop.f32.mrf.mxu0  ;;  %v1333_v22 = vadd.f32 %v2930_v44, %v1103_v41  ;;  %v1107_v41 = vadd.f32 %v3864_v19, %v3823_v50  ;;  %v1106_v44 = vadd.f32 %v3868_v53, %v3826_v55 }
 0x145   : > { %v3932_v6 = vpop.f32.mrf.mxu1  ;;  %4126 = vst [vmem:[#allocation21_spill] sm:$0xff] %v3934_v17  ;;  %v1332_v17 = vadd.f32 %v1253_v47, %v1102_v37  ;;  %v1335_v35 = vadd.f32 %v3860_v49, %v1105_v46  ;;  %v1109_v46 = vadd.f32 %v3872_v56, %v3829_v60  ;;  %v1111_v56 = vadd.f32 %v3880_v61, %v3835_v7 }
 0x146   : > { %4125 = vst [vmem:[#allocation20_spill] sm:$0xff] %v3932_v6  ;;  %v3939_v13 = vpop.f32.mrf.mxu0  ;;  %v1563_v43 = vadd.f32 %v2956_v24, %v1333_v22  ;;  %v1337_v50 = vadd.f32 %v3866_v21, %v1107_v41  ;;  %v1336_v53 = vadd.f32 %v3870_v54, %v1106_v44  ;;  %v1108_v22 = vadd.f32 %v3876_v58, %v3832_v1 }
 0x147   : > { %v3937_v11 = vpop.f32.mrf.mxu1  ;;  %4128 = vst [vmem:[#allocation23_spill] sm:$0xff] %v3939_v13  ;;  %v1562_v40 = vadd.f32 %v1483_v10, %v1332_v17  ;;  %v1565_v48 = vadd.f32 %v2959_v28, %v1335_v35  ;;  %v1564_v17 = vadd.f32 %v1493_v29, %v1334_v45  ;;  %v1339_v60 = vadd.f32 %v3874_v57, %v1109_v46 }
 0x148   : > { %4127 = vst [vmem:[#allocation22_spill] sm:$0xff] %v3937_v11  ;;  %v3944_v20 = vpop.f32.mrf.mxu0  ;;  %v1796_v47 = vadd.f32 %v2982_v25, %v1563_v43  ;;  %v1567_v10 = vadd.f32 %v2962_v33, %v1337_v50  ;;  %v1566_v43 = vadd.f32 %v1503_v34, %v1336_v53  ;;  %v1338_v58 = vadd.f32 %v3878_v59, %v1108_v22  ;;  %v4133_v53 = vld [vmem:[#allocation10_spill] sm:$0xff] }
 0x149   : > { %v3942_v5 = vpop.f32.mrf.mxu1  ;;  %v1795_v19 = vadd.f32 %v1716_v26, %v1562_v40  ;;  %v1798_v25 = vadd.f32 %v2985_v12, %v1565_v48  ;;  %v1797_v29 = vadd.f32 %v1726_v31, %v1564_v17  ;;  %v1110_v57 = vadd.f32 %v3884_v63, %v3838_v15  ;;  %v4131_v17 = vld [vmem:[#allocation8_spill] sm:$0xff] }
 0x14a   : > { %v3949_v6 = vpop.f32.mrf.mxu0  ;;  %v1800_v7 = vadd.f32 %v3912_v14, %v1567_v10  ;;  %v1569_v61 = vadd.f32 %v3916_v38, %v1339_v60  ;;  %v1341_v35 = vadd.f32 %v3882_v62, %v1111_v56  ;;  %v1113_v41 = vadd.f32 %v3888_v2, %v3842_v23  ;;  %v4137_v56 = vld [vmem:[#allocation6_spill] sm:$0xff] }
 0x14b   : > { %v3947_v42 = vpop.f32.mrf.mxu1  ;;  %v1799_v44 = vadd.f32 %v3914_v36, %v1566_v43  ;;  %v1568_v15 = vadd.f32 %v3920_v39, %v1338_v58  ;;  %v1340_v38 = vadd.f32 %v3886_v0, %v1110_v57  ;;  %v1112_v45 = vadd.f32 %v3892_v4, %v3846_v27  ;;  %v4130_v27 = vld [vmem:[#allocation18_spill] sm:$0xff] }
 0x14c   : > { %v3954_v13 = vpop.f32.mrf.mxu0  ;;  %v1802_v48 = vadd.f32 %v3918_v16, %v1569_v61  ;;  %v1571_v23 = vadd.f32 %v3924_v8, %v1341_v35  ;;  %v1343_v39 = vadd.f32 %v3890_v3, %v1113_v41  ;;  %v1115_v46 = vadd.f32 %v3896_v9, %v3850_v32 }
 0x14d   : > { %v3952_v11 = vpop.f32.mrf.mxu1  ;;  %v1570_v4 = vadd.f32 %v4130_v27, %v1340_v38  ;;  %v1342_v8 = vadd.f32 %v4131_v17, %v1112_v45  ;;  %v4135_v32 = vld [vmem:[#allocation20_spill] sm:$0xff]  ;;  %v4145_v38 = vld [vmem:[#allocation13_spill] sm:$0xff] }
 0x14e   : > { %v3964_v37 = vpop.f32.mrf.mxu0  ;;  %v1573_v9 = vadd.f32 %v4135_v32, %v1343_v39 }
 0x14f   : > { %v3962_v18 = vpop.f32.mrf.mxu1  ;;  %v4140_v58 = vld [vmem:[#allocation22_spill] sm:$0xff] }
 0x150   : > { %v3034_v51 = vpop.f32.mrf.mxu0  ;;  %v1572_v57 = vadd.f32 %v4140_v58, %v1342_v8 }
 0x151   : > { %v3008_v49 = vpop.f32.mrf.mxu1 }
 0x152   : > { %v2026_v55 = vadd.f32 %v3008_v49, %v1796_v47  ;;  %v2176_v24 = vpop.f32.mrf.mxu0 }
 0x153   : > { %v1946_v52 = vpop.f32.mrf.mxu1 }
 0x154   : > { %v2256_v28 = vadd.f32 %v3034_v51, %v2026_v55  ;;  %v2025_v30 = vadd.f32 %v1946_v52, %v1795_v19  ;;  %v3037_v26 = vpop.f32.mrf.mxu0  ;;  %v4129_v51 = vld [vmem:[#allocation16_spill] sm:$0xff]  ;;  %v4132_v55 = vld [vmem:[#allocation5_spill] sm:$0xff] }
 0x155   : > { %v3011_v21 = vpop.f32.mrf.mxu1  ;;  %v1801_v50 = vadd.f32 %v4129_v51, %v1568_v15  ;;  %v1114_v22 = vadd.f32 %v4133_v53, %v4132_v55 }
 0x156   : > { %2272 = vst [vmem:[%s3978_s5 + $0x8] sm:$0xff] %v2256_v28  ;;  %v2255_v1 = vadd.f32 %v2176_v24, %v2025_v30  ;;  %v2028_v54 = vadd.f32 %v3011_v21, %v1798_v25  ;;  %v2186_v33 = vpop.f32.mrf.mxu0  ;;  %v4134_v24 = vld [vmem:[#allocation17_spill] sm:$0xff]  ;;  %v4138_v21 = vld [vmem:[#allocation12_spill] sm:$0xff] }
 0x157   : > { %v1956_v12 = vpop.f32.mrf.mxu1  ;;  %v1804_v25 = vadd.f32 %v4134_v24, %v1571_v23  ;;  %v4136_v30 = vld [vmem:[#allocation9_spill] sm:$0xff] }
 0x158   : > { %2271 = vst [vmem:[%s3978_s5] sm:$0xff] %v2255_v1  ;;  %v2258_v31 = vadd.f32 %v3037_v26, %v2028_v54  ;;  %v2027_v34 = vadd.f32 %v1956_v12, %v1797_v29  ;;  %v3040_v59 = vpop.f32.mrf.mxu0  ;;  %v1345_v60 = vadd.f32 %v4136_v30, %v1115_v46  ;;  %v1117_v26 = vadd.f32 %v4138_v21, %v4137_v56  ;;  %v4139_v1 = vld [vmem:[#allocation19_spill] sm:$0xff] }
 0x159   : > { %v3014_v40 = vpop.f32.mrf.mxu1  ;;  %v1803_v54 = vadd.f32 %v4139_v1, %v1570_v4  ;;  %v4147_v46 = vld [vmem:[#allocation15_spill] sm:$0xff] }
 0x15a   : > { %2274 = vst [vmem:[%s3978_s5 + $0x18] sm:$0xff] %v2258_v31  ;;  %v2257_v63 = vadd.f32 %v2186_v33, %v2027_v34  ;;  %v2030_v14 = vadd.f32 %v3014_v40, %v1800_v7  ;;  %v2196_v62 = vpop.f32.mrf.mxu0  ;;  %v4141_v7 = vld [vmem:[#allocation11_spill] sm:$0xff]  ;;  %v4143_v34 = vld [vmem:[#allocation14_spill] sm:$0xff]  ;;  %v1575_v15 = vadd.f32 %v3942_v5, %v1345_v60  ;;  %v1347_v45 = vadd.f32 %v4145_v38, %v1117_v26 }
 0x15b   : > { %v1966_v47 = vpop.f32.mrf.mxu1  ;;  %v1344_v61 = vadd.f32 %v4141_v7, %v1114_v22  ;;  %v4142_v31 = vld [vmem:[#allocation7_spill] sm:$0xff] }
 0x15c   : > { %2273 = vst [vmem:[%s3978_s5 + $0x10] sm:$0xff] %v2257_v63  ;;  %v2260_v2 = vadd.f32 %v3040_v59, %v2030_v14  ;;  %v2029_v36 = vadd.f32 %v1966_v47, %v1799_v44  ;;  %v3043_v0 = vpop.f32.mrf.mxu0  ;;  %v1116_v35 = vadd.f32 %v4143_v34, %v4142_v31  ;;  %v4144_v59 = vld [vmem:[#allocation21_spill] sm:$0xff]  ;;  %v1808_v51 = vadd.f32 %v3944_v20, %v1575_v15 }
 0x15d   : > { %v3017_v49 = vpop.f32.mrf.mxu1  ;;  %v1806_v44 = vadd.f32 %v4144_v59, %v1573_v9 }
 0x15e   : > { %2276 = vst [vmem:[%s3978_s5 + $0x28] sm:$0xff] %v2260_v2  ;;  %v2259_v19 = vadd.f32 %v2196_v62, %v2029_v36  ;;  %v2032_v16 = vadd.f32 %v3017_v49, %v1802_v48  ;;  %v2206_v3 = vpop.f32.mrf.mxu0  ;;  %v4146_v48 = vld [vmem:[#allocation23_spill] sm:$0xff]  ;;  %v1574_v2 = vadd.f32 %v3947_v42, %v1344_v61  ;;  %v1346_v5 = vadd.f32 %v4147_v46, %v1116_v35 }
 0x15f   : > { %v1976_v52 = vpop.f32.mrf.mxu1  ;;  %v1805_v23 = vadd.f32 %v4146_v48, %v1572_v57 }
 0x160   : > { %2275 = vst [vmem:[%s3978_s5 + $0x20] sm:$0xff] %v2259_v19  ;;  %v2262_v10 = vadd.f32 %v3043_v0, %v2032_v16  ;;  %v2031_v28 = vadd.f32 %v1976_v52, %v1801_v50  ;;  %v3046_v43 = vpop.f32.mrf.mxu0  ;;  %v1577_v50 = vadd.f32 %v3952_v11, %v1347_v45  ;;  %v1807_v16 = vadd.f32 %v3949_v6, %v1574_v2 }
 0x161   : > { %v3020_v29 = vpop.f32.mrf.mxu1  ;;  %v1576_v17 = vadd.f32 %v3962_v18, %v1346_v5 }
 0x162   : > { %2278 = vst [vmem:[%s3978_s5 + $0x38] sm:$0xff] %v2262_v10  ;;  %v2261_v12 = vadd.f32 %v2206_v3, %v2031_v28  ;;  %v2034_v33 = vadd.f32 %v3020_v29, %v1804_v25  ;;  %v2216_v40 = vpop.f32.mrf.mxu0  ;;  %v1810_v53 = vadd.f32 %v3954_v13, %v1577_v50 }
 0x163   : > { %v1986_v41 = vpop.f32.mrf.mxu1  ;;  %v1809_v6 = vadd.f32 %v3964_v37, %v1576_v17 }
 0x164   : > { %2277 = vst [vmem:[%s3978_s5 + $0x30] sm:$0xff] %v2261_v12  ;;  %v2264_v63 = vadd.f32 %v3046_v43, %v2034_v33  ;;  %v2033_v14 = vadd.f32 %v1986_v41, %v1803_v54  ;;  %v3049_v62 = vpop.f32.mrf.mxu0 }
 0x165   : > { %v3023_v47 = vpop.f32.mrf.mxu1 }
 0x166   : > { %2280 = vst [vmem:[%s3978_s5 + $0x48] sm:$0xff] %v2264_v63  ;;  %v2263_v36 = vadd.f32 %v2216_v40, %v2033_v14  ;;  %v2036_v39 = vadd.f32 %v3023_v47, %v1806_v44  ;;  %v2226_v0 = vpop.f32.mrf.mxu0 }
 0x167   : > { %v1996_v49 = vpop.f32.mrf.mxu1 }
 0x168   : > { %2279 = vst [vmem:[%s3978_s5 + $0x40] sm:$0xff] %v2263_v36  ;;  %v2266_v27 = vadd.f32 %v3049_v62, %v2036_v39  ;;  %v2035_v4 = vadd.f32 %v1996_v49, %v1805_v23  ;;  %v3052_v42 = vpop.f32.mrf.mxu0 }
 0x169   : > { %v3026_v19 = vpop.f32.mrf.mxu1 }
 0x16a   : > { %2282 = vst [vmem:[%s3978_s5 + $0x58] sm:$0xff] %v2266_v27  ;;  %v2265_v8 = vadd.f32 %v2226_v0, %v2035_v4  ;;  %v2038_v55 = vadd.f32 %v3026_v19, %v1808_v51  ;;  %v2236_v11 = vpop.f32.mrf.mxu0 }
 0x16b   : > { %v2006_v20 = vpop.f32.mrf.mxu1 }
 0x16c   : > { %2281 = vst [vmem:[%s3978_s5 + $0x50] sm:$0xff] %v2265_v8  ;;  %v2268_v22 = vadd.f32 %v3052_v42, %v2038_v55  ;;  %v2037_v52 = vadd.f32 %v2006_v20, %v1807_v16  ;;  %v3055_v24 = vpop.f32.mrf.mxu0 }
 0x16d   : > { %v3029_v3 = vpop.f32.mrf.mxu1 }
 0x16e   : > { %2284 = vst [vmem:[%s3978_s5 + $0x68] sm:$0xff] %v2268_v22  ;;  %v2267_v18 = vadd.f32 %v2236_v11, %v2037_v52  ;;  %v2040_v25 = vadd.f32 %v3029_v3, %v1810_v53  ;;  %v2246_v10 = vpop.f32.mrf.mxu0 }
 0x16f   : > { %v2016_v32 = vpop.f32.mrf.mxu1 }
 0x170   : > { %2283 = vst [vmem:[%s3978_s5 + $0x60] sm:$0xff] %v2267_v18  ;;  %v2270_v9 = vadd.f32 %v3055_v24, %v2040_v25  ;;  %v2039_v13 = vadd.f32 %v2016_v32, %v1809_v6 }
 0x172   : > { %2286 = vst [vmem:[%s3978_s5 + $0x78] sm:$0xff] %v2270_v9  ;;  %v2269_v37 = vadd.f32 %v2246_v10, %v2039_v13 }
 0x174   : > { %2285 = vst [vmem:[%s3978_s5 + $0x70] sm:$0xff] %v2269_v37 }
 0x175   : > { %3145 = shalt.err (!%p3142_p6)
}
 0x176   : > { %s3146_s29 = scalar_lea.hbm %s4045_s11, 2048  ;;  %s3150_s6 = scalar_lea.hbm %s4107_s3, 8192 }
 0x177   : > { %p3147_p7 = scmp.ne.s32.totalorder %s4045_s11, %s3146_s29  ;;  %p3151_p11 = scmp.lt.s32.totalorder %s4045_s11, %s4107_s3 }
 0x178   : > { %p3152_p12 = scmp.lt.s32.totalorder %s3150_s6, %s3146_s29 }
 0x179   : > { %p3148_p9 = pnand %p3147_p7, %p3300_p3 }
 0x17a   : > { %p3153_p13 = por %p3152_p12, %p3151_p11 }
 0x17b   : > { %p3149_p10 = pneg %p3148_p9 }
 0x17d   : > { %p3154_p0 = pnand %p3153_p13, %p3149_p10 }
 0x17f   : > { %3157 = shalt.err (!%p3154_p0)
}
 0x180   : > { %s3227_s15 = smov 128   ;;  %s3228_s9 = smov 8  }
 0x181   : > { %3059 = dma.vmem_to_hbm [thread:$0]  (%p3300_p3), %s4047_s16, 2048, %s4045_s11, %s4053_s20, %s3227_s15, %s3227_s15, %s3228_s9  }
 0x182 PF: > { %p3065_p1 = scmp.ge.s32.totalorder %s3224_s19, 2  ;;  %s2319_s10 = sand.u32 1, %s3196_s12  }
 0x183   : > { %s2320_s21 = scalar_lea.sflag [#allocation3], %s2319_s10 }
 0x184   : > { %p3062_p2 = pnand %p3065_p1, %p3309_p8 }
 0x186   : > { %p3063_p4 = pneg %p3062_p2 }
 0x188   : > { %3191 = dma.done.wait (%p3063_p4), %s2320_s21, 2048  }
 0x189   : > { %3193 = vsyncadd (%p3063_p4), %s2320_s21, 4294965248  ;;  %s16_s19 = sadd.s32 1, %s3224_s19   ;;  %s4148_s12 = smov %s3200_s13 }
 0x18a   : > { %p13_p5 = scmp.ge.s32.totalorder %s16_s19, 6   ;;  %s4149_s13 = smov %s3204_s14 }
 0x18b   : > { %s4150_s14 = smov %s3318_s30  ;;  %s4151_s15 = smov %s3216_s17 }
 0x18c   : > { %s4152_s16 = smov %s3220_s18  ;;  %s4153_s17 = smov %s4156_s22 }
 0x18d   : > { %s4154_s18 = smov %s4160_s23  ;;  %15 = sbr.rel (!%p13_p5) target bundleno = 5 (0x5), region = 78 }
 0x192   :  { %2325 = vsyncpa [#allocation3], 1 }
 0x193   :  { %2327 = vsyncpa [#allocation3 + $0x1], 1 }

</bundles_post_ra>
